<compile_context>
chip_gen: v6e
topology: v6e:2x2x1
jax: 0.10.0
libtpu: 0.0.40
codegen_flags: <defaults>
</compile_context>

<pallas_src>
import jax
import jax.numpy as jnp
from jax.experimental import pallas as pl
from jax.experimental.pallas import tpu as pltpu


def _round_up(x, m):
    return (x + m - 1) // m * m


def _default_tile_m():
    """Per-generation default M tile (overridable via tile_m=...)."""
    try:
        kind = jax.devices()[0].device_kind.lower()
    except Exception:
        return 512
    if "v7" in kind:
        # v7x: HBM ~3.2 TB/s, per-step overhead ~0.35us -> fewer, bigger steps.
        return 2048
    # v6e/v5e: 512 is ~85% of the HBM roofline and fits the scoped VMEM default.
    return 512


def _choose_tile_m(M, tile_m):
    """Pick TM: multiple of 8 (or full M), ideally dividing M exactly (no
    padded rows, no post-call slice), capped so the grid has >= 2 steps for
    the two TensorCores on v7x."""
    if M <= 8:
        return M, M
    target = max(8, min(tile_m, _round_up(pl.cdiv(M, 2), 8)))
    target -= target % 8
    best = 0
    for tm in range(target, 7, -8):
        if M % tm == 0:
            best = tm
            break
    if best >= 64 or (best > 0 and M <= 4096):
        return best, M
    # Fallback: no usable aligned divisor. Pad M up (padded rows read zeros ->
    # bias only) and slice afterwards (costs one extra output copy; rare).
    return target, _round_up(M, target)


def _patch_embed_kernel(x_ref, w_ref, b_ref, o_ref):
    # x_ref: (TM, K) bf16 patch-matrix tile       (pipelined over the grid)
    # w_ref: (K, E)  bf16 projection weight       (resident: constant index_map)
    # b_ref: (1, E)  f32 bias                     (resident)
    # o_ref: (TM, E) output tile
    acc = jnp.dot(x_ref[...], w_ref[...], preferred_element_type=jnp.float32)
    o_ref[...] = (acc + b_ref[...]).astype(o_ref.dtype)


def patch_embed_forward(x, weight, bias, patch_size, *, tile_m=None, out_dtype=None):
    """ViT PatchEmbed forward.

    x: (B, C, H, W); weight: (E, C, P, P); bias: (E,) -> (B, num_patches, E).
    out_dtype: optional (e.g. jnp.bfloat16) to halve output HBM traffic.
    """
    B, C, H, W = x.shape
    E = weight.shape[0]
    P = patch_size
    Hp, Wp = H // P, W // P
    num_patches = Hp * Wp
    M = B * num_patches
    K = C * P * P
    out_dtype = x.dtype if out_dtype is None else jnp.dtype(out_dtype)

    # --- im2col glue: (B,C,H,W) -> (M, K), K ordered (c, dh, dw) to match the
    # Conv2d weight layout.  One fused XLA pass (transpose + bf16 cast); no
    # pad copies.  allow_input_fusion lets XLA fold this producer into the
    # Pallas operand when profitable.
    xp = x.reshape(B, C, Hp, P, Wp, P)
    xp = jnp.transpose(xp, (0, 2, 4, 1, 3, 5)).reshape(M, K).astype(jnp.bfloat16)
    w_mat = weight.reshape(E, K).T.astype(jnp.bfloat16)      # (K, E)
    b_mat = bias.astype(jnp.float32).reshape(1, E)

    if tile_m is None:
        tile_m = _default_tile_m()
    TM, Mp = _choose_tile_m(M, tile_m)
    if Mp != M:   # rare fallback only
        xp = jnp.pad(xp, ((0, Mp - M), (0, 0)))

    out_bytes = jnp.dtype(out_dtype).itemsize
    # Double-buffered x/out tiles + resident weight/bias (+margin).
    vmem_needed = (2 * TM * K * 2) + (2 * TM * E * out_bytes) \
                  + (2 * K * E * 2) + (2 * E * 4)
    vmem_limit = int(min(64 * 1024 * 1024, max(16 * 1024 * 1024, 2 * vmem_needed)))

    cost = pl.CostEstimate(
        flops=2 * M * K * E,
        bytes_accessed=M * K * 2 + K * E * 2 + E * 4 + M * E * out_bytes,
        transcendentals=0,
    )

    out = pl.pallas_call(
        _patch_embed_kernel,
        out_shape=jax.ShapeDtypeStruct((Mp, E), out_dtype),
        grid_spec=pltpu.PrefetchScalarGridSpec(
            num_scalar_prefetch=0,
            grid=(Mp // TM,),
            in_specs=[
                pl.BlockSpec((TM, K), lambda i: (i, 0)),    # patch rows: tiled
                pl.BlockSpec((K, E), lambda i: (0, 0)),     # weight: resident
                pl.BlockSpec((1, E), lambda i: (0, 0)),     # bias: resident
            ],
            out_specs=pl.BlockSpec((TM, E), lambda i: (i, 0)),
        ),
        compiler_params=pltpu.CompilerParams(
            dimension_semantics=("parallel",),
            allow_input_fusion=[True, False, False],
            vmem_limit_bytes=vmem_limit,
        ),
        cost_estimate=cost,
    )(xp, w_mat, b_mat)

    if Mp != M:
        out = out[:M]
    return out.reshape(B, num_patches, E)


if __name__ == "__main__":
    # Small, module-consistent shapes:
    #   img_size=16, patch_size=4, in_chans=4, embed_dim=32, batch=2
    B, C, H, W = 2, 4, 16, 16
    P, E = 4, 32

    key = jax.random.PRNGKey(0)
    kx, kw, kb = jax.random.split(key, 3)
    x = jax.random.normal(kx, (B, C, H, W), dtype=jnp.float32)
    weight = jax.random.normal(kw, (E, C, P, P), dtype=jnp.float32) * 0.02
    bias = jax.random.normal(kb, (E,), dtype=jnp.float32) * 0.02

    out = jax.block_until_ready(patch_embed_forward(x, weight, bias, P))

    # Reference: same bf16 operand rounding as the kernel, exact f32 accumulate.
    Hp, Wp = H // P, W // P
    xp = jnp.transpose(x.reshape(B, C, Hp, P, Wp, P), (0, 2, 4, 1, 3, 5))
    xp = xp.reshape(B, Hp * Wp, C * P * P)
    xp_bf = xp.astype(jnp.bfloat16).astype(jnp.float32)
    w_bf = weight.reshape(E, -1).astype(jnp.bfloat16).astype(jnp.float32)
    ref = jnp.einsum("bpk,ek->bpe", xp_bf, w_bf,
                     precision=jax.lax.Precision.HIGHEST) + bias

    assert out.shape == (B, Hp * Wp, E), out.shape
    err = float(jnp.max(jnp.abs(out - ref)))
    assert jnp.allclose(out, ref, atol=1e-3, rtol=1e-3), err

    print("KERNEL_OK")
</pallas_src>

<mosaic_0001>
module attributes {stable_mosaic.version = 11 : i64} {
  func.func @_patch_embed_kernel(%arg0: i32, %arg1: memref<16x64xbf16, #tpu.memory_space<vmem>>, %arg2: memref<64x32xbf16, #tpu.memory_space<vmem>>, %arg3: memref<1x32xf32, #tpu.memory_space<vmem>>, %arg4: memref<16x32xf32, #tpu.memory_space<vmem>>) attributes {dimension_semantics = [#tpu.dimension_semantics<parallel>], iteration_bounds = array<i64: 2>, scalar_prefetch = 0 : i64, scratch_operands = 0 : i64, tpu.core_type = #tpu.core_type<tc>, window_params = [{transform_indices = @transform_0, window_bounds = array<i64: 16, 64>}, {pipeline_mode = #tpu.pipeline_mode<synchronous>, transform_indices = @transform_1, window_bounds = array<i64: 64, 32>}, {pipeline_mode = #tpu.pipeline_mode<synchronous>, transform_indices = @transform_2, window_bounds = array<i64: 1, 32>}, {transform_indices = @transform_3, window_bounds = array<i64: 16, 32>}]} {
    %c0 = arith.constant 0 : index
    %c0_0 = arith.constant 0 : index
    %0 = vector.load %arg1[%c0, %c0_0] : memref<16x64xbf16, #tpu.memory_space<vmem>>, vector<16x64xbf16>
    %c0_1 = arith.constant 0 : index
    %c0_2 = arith.constant 0 : index
    %1 = vector.load %arg2[%c0_1, %c0_2] : memref<64x32xbf16, #tpu.memory_space<vmem>>, vector<64x32xbf16>
    %cst = arith.constant dense<0.000000e+00> : vector<16x32xf32>
    %2 = tpu.matmul %0, %1, %cst {dimension_numbers = #tpu.dot_dimension_numbers<[1], [0], [0], [1], [0, 0, 1, 1], [], []>} : vector<16x64xbf16>, vector<64x32xbf16>, vector<16x32xf32> -> vector<16x32xf32>
    %c0_3 = arith.constant 0 : index
    %c0_4 = arith.constant 0 : index
    %3 = vector.load %arg3[%c0_3, %c0_4] : memref<1x32xf32, #tpu.memory_space<vmem>>, vector<1x32xf32>
    %4 = vector.broadcast %3 : vector<1x32xf32> to vector<16x32xf32>
    %5 = arith.addf %2, %4 : vector<16x32xf32>
    %c0_5 = arith.constant 0 : index
    %c0_6 = arith.constant 0 : index
    %6 = vector.load %arg4[%c0_5, %c0_6] : memref<16x32xf32, #tpu.memory_space<vmem>>, vector<16x32xf32>
    tpu.vector_store %arg4[%c0_5, %c0_6], %5 {strides = array<i32>} : memref<16x32xf32, #tpu.memory_space<vmem>>, vector<16x32xf32>,
    return
  }
  func.func @transform_0(%arg0: i32) -> (i32, i32) {
    %c0_i32 = arith.constant 0 : i32
    %c0_i32_0 = arith.constant 0 : i32
    return %arg0, %c0_i32 : i32, i32
  }
  func.func @transform_1(%arg0: i32) -> (i32, i32) {
    %c0_i32 = arith.constant 0 : i32
    %c0_i32_0 = arith.constant 0 : i32
    %c0_i32_1 = arith.constant 0 : i32
    return %c0_i32, %c0_i32_0 : i32, i32
  }
  func.func @transform_2(%arg0: i32) -> (i32, i32) {
    %c0_i32 = arith.constant 0 : i32
    %c0_i32_0 = arith.constant 0 : i32
    %c0_i32_1 = arith.constant 0 : i32
    return %c0_i32, %c0_i32_0 : i32, i32
  }
  func.func @transform_3(%arg0: i32) -> (i32, i32) {
    %c0_i32 = arith.constant 0 : i32
    %c0_i32_0 = arith.constant 0 : i32
    return %arg0, %c0_i32 : i32, i32
  }
}

</mosaic_0001>

<bundles_post_ra>
// kernel: tpu_custom_call.1
= control target key start
LH: loop header
LB: loop body
LE: loop exit
PB: predicated region body
PF: predicated region fallthrough
CT: control target
= control target key end

     0   :  { %8 = vsyncpa [#allocation3], 0  ;;  %s631_s0 = inlined_call_operand.vmem [shape: bf16[32,64], index: 0, kind: input, shape index: {}]   ;;  %s632_s1 = inlined_call_operand.vmem [shape: bf16[64,32], index: 1, kind: input, shape index: {}]   ;;  %s633_s2 = inlined_call_operand.vmem [shape: f32[1,32], index: 2, kind: input, shape index: {}]   ;;  %s634_s3 = inlined_call_operand.hbm [shape: f32[32,32], index: 3, kind: output, shape index: {}]  }
   0x1   :  { %10 = vsyncpa [#allocation3 + $0x1], 0  ;;  %s515_s12 = smov 0   ;;  %s517_s13 = smov 0  }
   0x2   :  { %s519_s14 = smov 0   ;;  %s521_s15 = smov 0  }
   0x3 LB: > { %s536_s16 = sadd.s32 4294967295, %s488_s15   ;;  %s343_s17 = sadd.s32 4294967294, %s488_s15   ;;  %s488_s15 = sphi %s521_s15, %s640_s15   ;;  %s484_s14 = sphi %s519_s14, %s639_s14   ;;  %s480_s13 = sphi %s517_s13, %s638_s13   ;;  %s476_s12 = sphi %s515_s12, %s637_s12  }
   0x4   : > { %s540_s18 = sadd.s32 1, %s488_s15   ;;  %s91_s19 = sadd.s32 1, %s484_s14 }
   0x5   : > { %s88_s20 = ssub.s32 %s488_s15, %s540_s18  ;;  %p101_p0 = scmp.ne.s32.totalorder %s484_s14, %s480_s13 }
   0x6   : > { %p89_p1 = scmp.eq.s32.totalorder %s88_s20, 0  ;;  %p102_p2 = scmp.eq.s32.totalorder %s536_s16, 1 }
   0x7   : > { %p107_p3 = scmp.ne.s32.totalorder %s480_s13, %s476_s12  ;;  %p108_p4 = scmp.eq.s32.totalorder %s343_s17, 1 }
   0x8   : > { %s551_s21 = scalar_select %p89_p1, %s484_s14, %s91_s19  }
   0x9   : > { %p553_p5 = por %p102_p2, %p101_p0  ;;  %p557_p6 = por %p108_p4, %p107_p3 }
   0xa   : > { %p346_p7 = scmp.ge.s32.totalorder %s488_s15, 1  ;;  %p141_p8 = scmp.lt.s32.totalorder %s488_s15, 3 }
   0xc   : > { %p142_p9 = pnand %p346_p7, %p141_p8 }
   0xd   : > { %s348_s28 = sshll.u32 (!%p142_p9), %s536_s16, 1  ;;  %s162_s10 = sand.u32 (!%p142_p9), 1, %s480_s13  }
   0xe   : > { %145 = sbr.rel (%p142_p9) target bundleno = 249 (0xf9), region = 32  ;;  %p166_p10 = scmp.lt.s32.totalorder (!%p142_p9), %s348_s28, 3 }
   0xf   : > { %s347_s11 = sshll.u32 (!%p142_p9), %s162_s10, 4  ;;  %s362_s25 = sshll.u32 (!%p142_p9), %s536_s16, 8 }
  0x10   : > { %s164_s20 = scalar_lea.vmem (!%p142_p9), [#allocation2], %s347_s11  ;;  %s591_s29 = scalar_lea.sflag (!%p142_p9), [#allocation3], %s162_s10 }
  0x11   : > { %s281_s24 = sshll.u32 (!%p142_p9), %s164_s20, 4  ;;  %s492_s16 = smov (!%p142_p9), [#allocation2]   ;;  %s584_s24 = int_to_ptr.vmem [resolvable:$true] %s281_s24 }
  0x12   : > { %s428_s30 = scalar_lea.vmem (!%p142_p9), %s584_s24, 256 }
  0x13   : > { %v423_v0 = vld [vmem:[%s632_s1 + $0x18] sm:$0xff]   ;;  %v490_v1 = vmov 0.0   ;;  %v424_v2 = vld [vmem:[%s632_s1 + $0x10] sm:$0xff]   ;;  %vm491_vm0 = vmmov 0   ;;  %s642_s28 = smov (!%p166_p10, %s348_s28), 3  ;;  %v425_v3 = vld [vmem:[%s632_s1 + $0x8] sm:$0xff]   ;;  %p429_p11 = scmp.ne.s32.totalorder %s584_s24, %s428_s30 }
  0x14   : > { %368 = vmatprep.subr.bf16.mxu0 %v490_v1  ;;  %376 = vmatprep.mubr.msk.bf16.mxu0 %vm491_vm0, %v490_v1  ;;  %s349_s4 = sshll.u32 %s642_s28, 2  ;;  %v426_v4 = vld [vmem:[%s632_s1] sm:$0xff]   ;;  %vm219_vm1 = vcmask 523264   ;;  %vm264_vm2 = vcmask 261120   ;;  %s589_s28 = scalar_lea.hbm %s634_s3, %s362_s25 }
  0x15   : > { %369 = vmatpush3.bf16.msra.mxu0 %v423_v0  ;;  %s169_s7 = scalar_lea.vmem %s631_s0, %s349_s4  ;;  %v350_v6 = vld [vmem:[%s633_s2] ss:$0 sm:$0xff]  ;;  %p430_p12 = pnand %p429_p11, %p553_p5 }
  0x16   : > { %370 = vmatprep.subr.bf16.mxu0 %v490_v1  ;;  %v427_v5 = vld [vmem:[%s169_s7] sm:$0xff]   ;;  %s432_s4 = sshll.u32 %s492_s16, 4  ;;  %s433_s4 = int_to_ptr.vmem [resolvable:$false] %s432_s4 }
  0x17   : > { %p431_p13 = pneg %p430_p12  ;;  %s434_s5 = scalar_lea.vmem %s433_s4, 512 }
  0x18   : > { %p435_p0 = scmp.lt.s32.totalorder %s584_s24, %s433_s4  ;;  %p436_p1 = scmp.lt.s32.totalorder %s434_s5, %s428_s30 }
  0x19   : > { %371 = vmatpush3.bf16.msra.mxu0 %v424_v2 }
  0x1a   : > { %372 = vmatprep.subr.bf16.mxu0 %v490_v1  ;;  %p437_p2 = por %p436_p1, %p435_p0 }
  0x1c   : > { %p438_p3 = pnand %p437_p2, %p431_p13 }
  0x1d   : > { %373 = vmatpush3.bf16.msra.mxu0 %v425_v3 }
  0x1e   : > { %374 = vmatprep.subr.bf16.mxu0 %v490_v1 }
  0x21   : > { %375 = vmatpush3.bf16.msra.mxu0 %v426_v4 }
  0x24   : > { %377 = vmatmul.mubr.msk.bf16.vlgmr.msra.gmra.mxu0 %vm219_vm1, %v427_v5 }
  0xe4   : > { %v257_v7 = vpop.f32.mrf.mxu0 }
  0xe5   : > { %v258_v8 = vadd.f32 %v350_v6, %v257_v7 }
  0xe6   : > { %v378_v9 = vpop.f32.mrf.mxu0 }
  0xe7   : > { %265 = vst.msk [vmem:[%s164_s20] sm:$0xff] %vm264_vm2, %v258_v8 }
  0xe8   : > { %v260_v10 = vpop.f32.mrf.mxu0 }
  0xe9   : > { %v261_v11 = vadd.f32 %v350_v6, %v260_v10 }
  0xea   : > { %v379_v12 = vpop.f32.mrf.mxu0 }
  0xeb   : > { %266 = vst.msk [vmem:[%s164_s20 + $0x8] sm:$0xff] %vm264_vm2, %v261_v11 }
  0xec   : > { %441 = shalt.err (!%p438_p3)
}
  0xed   : > { %s442_s6 = scalar_lea.hbm %s589_s28, 256  ;;  %s446_s9 = scalar_lea.hbm %s634_s3, 512 }
  0xee   : > { %p443_p4 = scmp.ne.s32.totalorder %s589_s28, %s442_s6  ;;  %p447_p9 = scmp.lt.s32.totalorder %s589_s28, %s634_s3 }
  0xef   : > { %p448_p10 = scmp.lt.s32.totalorder %s446_s9, %s442_s6 }
  0xf0   : > { %p444_p7 = pnand %p443_p4, %p553_p5 }
  0xf1   : > { %p449_p11 = por %p448_p10, %p447_p9 }
  0xf2   : > { %p445_p8 = pneg %p444_p7 }
  0xf4   : > { %p450_p12 = pnand %p449_p11, %p445_p8 }
  0xf6   : > { %453 = shalt.err (!%p450_p12)
}
  0xf7   : > { %s493_s17 = smov 128   ;;  %s494_s19 = smov 8  }
  0xf8   : > { %380 = dma.vmem_to_hbm [thread:$0]  (%p553_p5), %s584_s24, 256, %s589_s28, %s591_s29, %s493_s17, %s493_s17, %s494_s19  }
  0xf9 PF: > { %p386_p13 = scmp.ge.s32.totalorder %s488_s15, 2  ;;  %s296_s20 = sand.u32 1, %s476_s12  }
  0xfa   : > { %s297_s25 = scalar_lea.sflag [#allocation3], %s296_s20 }
  0xfb   : > { %p383_p0 = pnand %p386_p13, %p557_p6 }
  0xfd   : > { %p384_p1 = pneg %p383_p0 }
  0xff   : > { %471 = dma.done.wait (%p384_p1), %s297_s25, 256  }
 0x100   : > { %473 = vsyncadd (%p384_p1), %s297_s25, 4294967040  ;;  %p13_p2 = scmp.ge.s32.totalorder %s540_s18, 4   ;;  %s637_s12 = smov %s480_s13 }
 0x101   : > { %s638_s13 = smov %s484_s14  ;;  %s639_s14 = smov %s551_s21 }
 0x102   : > { %s640_s15 = smov %s540_s18  ;;  %15 = sbr.rel (!%p13_p2) target bundleno = 3 (0x3), region = 67 }
 0x107   :  { %302 = vsyncpa [#allocation3], 1 }
 0x108   :  { %304 = vsyncpa [#allocation3 + $0x1], 1 }

</bundles_post_ra>
